<compile_context>
chip_gen: v6e
topology: v6e:2x2x1
jax: 0.10.0
libtpu: 0.0.40
codegen_flags: <defaults>
</compile_context>

<pallas_src>
import jax
import jax.numpy as jnp
from jax.experimental import pallas as pl
from jax.experimental.pallas import tpu as pltpu


def _round_up(a, b):
    return (a + b - 1) // b * b


def _pad2(a, rows, cols):
    return jnp.pad(a, ((0, rows - a.shape[0]), (0, cols - a.shape[1])))


def _vmem_limit_bytes():
    # ~0.75 of the generation's physical VMEM (v7x: 64 MiB, v5e/v6e: 128 MiB).
    try:
        cap = int(pltpu.get_tpu_info().vmem_capacity_bytes)
    except Exception:
        cap = 64 << 20  # conservative fallback (v7x physical capacity)
    return max(32 << 20, (cap * 3) // 4)


# --------------------------------------------------------------------------
# phase 1: s2 = relu((adj @ x) @ W1 + b1) @ W2
# grid = (rows of adj / tm, adj reduction cols / tk)
# --------------------------------------------------------------------------
def make_phase1_kernel(tk, x_resident):
    def kernel(adj_ref, x_ref, w1_ref, b1_ref, w2_ref, s2_ref, acc_ref):
        k = pl.program_id(1)

        @pl.when(k == 0)
        def _():
            acc_ref[...] = jnp.zeros_like(acc_ref)

        if x_resident:
            # x is fully resident in VMEM; slice the k-strip in-kernel.
            x_blk = x_ref[pl.ds(pl.multiple_of(k * tk, tk), tk), :]
        else:
            x_blk = x_ref[...]

        # Reassociated layer 1: contract adj with x first (nfeat lanes < nhid).
        acc_ref[...] += jnp.dot(adj_ref[...], x_blk,
                                preferred_element_type=jnp.float32)

        @pl.when(k == pl.num_programs(1) - 1)
        def _():
            ax = acc_ref[...]
            # bias add + ReLU kept in f32 (no bf16 VPU on v5e).
            h1 = jnp.maximum(
                jnp.dot(ax.astype(w1_ref.dtype), w1_ref[...],
                        preferred_element_type=jnp.float32) + b1_ref[...],
                0.0,
            )
            # dropout: eval-mode => identity
            s2 = jnp.dot(h1.astype(w2_ref.dtype), w2_ref[...],
                         preferred_element_type=jnp.float32)
            s2_ref[...] = s2.astype(s2_ref.dtype)

    return kernel


# --------------------------------------------------------------------------
# phase 2: out = adj @ s2 + b2
# Accumulates directly into the resident f32 output block (no scratch).
# --------------------------------------------------------------------------
def make_phase2_kernel(tk, s2_resident):
    def kernel(adj_ref, s2_ref, b2_ref, out_ref):
        k = pl.program_id(1)

        @pl.when(k == 0)
        def _():
            out_ref[...] = jnp.broadcast_to(b2_ref[...], out_ref.shape)

        if s2_resident:
            s2_blk = s2_ref[pl.ds(pl.multiple_of(k * tk, tk), tk), :]
        else:
            s2_blk = s2_ref[...]

        out_ref[...] += jnp.dot(adj_ref[...], s2_blk,
                                preferred_element_type=jnp.float32)

    return kernel


# --------------------------------------------------------------------------
# wrapper
# --------------------------------------------------------------------------
def gcn_forward(x, adj, w1, b1, w2, b2, *, compute_dtype=jnp.bfloat16,
                resident_bytes_limit=16 << 20):
    n, nfeat = x.shape
    nhid = w1.shape[1]
    nout = w2.shape[1]

    # Lane-dense everything: pad all feature dims to multiples of 128.
    nfeat_p = _round_up(nfeat, 128)
    nhid_p = _round_up(nhid, 128)
    nout_p = _round_up(nout, 128)

    # Big adj strips (memory / step-overhead bound), independent row/col padding.
    n_128 = _round_up(n, 128)
    tm = min(512, n_128)
    tk = min(2048, n_128)
    n_rows_pad = _round_up(n, tm)   # adj rows, s2/out rows
    n_k_pad = _round_up(n, tk)      # adj cols, x rows, s2 rows for phase 2

    itemsize = jnp.dtype(compute_dtype).itemsize
    x_resident = n_k_pad * nfeat_p * itemsize <= resident_bytes_limit
    s2_resident = n_k_pad * nout_p * itemsize <= resident_bytes_limit

    # Zero padding is semantically inert for the sliced-out region; MXU operands
    # are cast to the compute dtype, biases stay f32.
    adj_p = _pad2(adj, n_rows_pad, n_k_pad).astype(compute_dtype)
    x_p = _pad2(x, n_k_pad, nfeat_p).astype(compute_dtype)
    w1_p = _pad2(w1, nfeat_p, nhid_p).astype(compute_dtype)
    b1_p = _pad2(b1.reshape(1, nhid), 1, nhid_p).astype(jnp.float32)
    w2_p = _pad2(w2, nhid_p, nout_p).astype(compute_dtype)
    b2_p = _pad2(b2.reshape(1, nout), 1, nout_p).astype(jnp.float32)

    grid = (n_rows_pad // tm, n_k_pad // tk)
    cparams = pltpu.CompilerParams(
        dimension_semantics=("parallel", "arbitrary"),
        vmem_limit_bytes=_vmem_limit_bytes(),
    )

    # ---- phase 1: s2 = relu((adj @ x) @ W1 + b1) @ W2 ----
    if x_resident:
        x_spec = pl.BlockSpec((n_k_pad, nfeat_p), lambda i, k: (0, 0))
    else:
        x_spec = pl.BlockSpec((tk, nfeat_p), lambda i, k: (k, 0))

    s2 = pl.pallas_call(
        make_phase1_kernel(tk, x_resident),
        out_shape=jax.ShapeDtypeStruct((n_rows_pad, nout_p), compute_dtype),
        grid_spec=pltpu.PrefetchScalarGridSpec(
            num_scalar_prefetch=0,
            grid=grid,
            in_specs=[
                pl.BlockSpec((tm, tk), lambda i, k: (i, k)),          # adj strip
                x_spec,                                               # x
                pl.BlockSpec((nfeat_p, nhid_p), lambda i, k: (0, 0)), # W1
                pl.BlockSpec((1, nhid_p), lambda i, k: (0, 0)),       # b1
                pl.BlockSpec((nhid_p, nout_p), lambda i, k: (0, 0)),  # W2
            ],
            out_specs=pl.BlockSpec((tm, nout_p), lambda i, k: (i, 0)),
            scratch_shapes=[pltpu.VMEM((tm, nfeat_p), jnp.float32)],
        ),
        compiler_params=cparams,
    )(adj_p, x_p, w1_p, b1_p, w2_p)

    # Align s2 rows with adj's padded columns. Rows >= n of s2 are garbage
    # (relu(b1) @ W2); adj's zero-padded columns annihilate them in phase 2,
    # so zero-padding or slicing them off is equally valid.
    if n_k_pad > n_rows_pad:
        s2 = jnp.pad(s2, ((0, n_k_pad - n_rows_pad), (0, 0)))
    elif n_k_pad < n_rows_pad:
        s2 = s2[:n_k_pad]

    # ---- phase 2: out = adj @ s2 + b2 ----
    if s2_resident:
        s2_spec = pl.BlockSpec((n_k_pad, nout_p), lambda i, k: (0, 0))
    else:
        s2_spec = pl.BlockSpec((tk, nout_p), lambda i, k: (k, 0))

    out = pl.pallas_call(
        make_phase2_kernel(tk, s2_resident),
        out_shape=jax.ShapeDtypeStruct((n_rows_pad, nout_p), jnp.float32),
        grid_spec=pltpu.PrefetchScalarGridSpec(
            num_scalar_prefetch=0,
            grid=grid,
            in_specs=[
                pl.BlockSpec((tm, tk), lambda i, k: (i, k)),      # adj strip
                s2_spec,                                          # s2
                pl.BlockSpec((1, nout_p), lambda i, k: (0, 0)),   # b2
            ],
            out_specs=pl.BlockSpec((tm, nout_p), lambda i, k: (i, 0)),
        ),
        compiler_params=cparams,
    )(adj_p, s2, b2_p)

    return out[:n, :nout]


def reference_gcn(x, adj, w1, b1, w2, b2):
    h = jnp.maximum(adj @ (x @ w1) + b1, 0.0)
    return adj @ (h @ w2) + b2


if __name__ == "__main__":
    key = jax.random.PRNGKey(0)
    N, nfeat, nhid, nout = 64, 16, 32, 8

    k_x, k_a, k_w1, k_b1, k_w2, k_b2 = jax.random.split(key, 6)

    x = jax.random.normal(k_x, (N, nfeat), dtype=jnp.float32)

    # Symmetric, row-normalized adjacency with self-loops (typical GCN input).
    a = (jax.random.uniform(k_a, (N, N)) > 0.85).astype(jnp.float32)
    a = jnp.maximum(a, a.T) + jnp.eye(N, dtype=jnp.float32)
    adj = a / jnp.sum(a, axis=1, keepdims=True)

    # GraphConvolution init: uniform(-stdv, stdv), stdv = 1/sqrt(fan_out)
    stdv1 = 1.0 / jnp.sqrt(jnp.float32(nhid))
    stdv2 = 1.0 / jnp.sqrt(jnp.float32(nout))
    w1 = jax.random.uniform(k_w1, (nfeat, nhid), minval=-stdv1, maxval=stdv1,
                            dtype=jnp.float32)
    b1 = jax.random.uniform(k_b1, (1, nhid), minval=-stdv1, maxval=stdv1,
                            dtype=jnp.float32)
    w2 = jax.random.uniform(k_w2, (nhid, nout), minval=-stdv2, maxval=stdv2,
                            dtype=jnp.float32)
    b2 = jax.random.uniform(k_b2, (1, nout), minval=-stdv2, maxval=stdv2,
                            dtype=jnp.float32)

    ref = reference_gcn(x, adj, w1, b1, w2, b2)

    # Exact-path check (f32 compute end-to-end, resident x/s2 path).
    out_f32 = jax.block_until_ready(
        gcn_forward(x, adj, w1, b1, w2, b2, compute_dtype=jnp.float32))
    assert out_f32.shape == (N, nout)
    assert jnp.allclose(out_f32, ref, atol=1e-4, rtol=1e-4)

    # Fast path (bf16 MXU operands, f32 accumulation, resident x/s2 path).
    out_bf16 = jax.block_until_ready(
        gcn_forward(x, adj, w1, b1, w2, b2, compute_dtype=jnp.bfloat16))
    assert out_bf16.shape == (N, nout)
    assert jnp.allclose(out_bf16, ref, atol=2e-2, rtol=2e-2)

    # Exercise the streamed (large-graph) fallback path as well.
    out_stream = jax.block_until_ready(
        gcn_forward(x, adj, w1, b1, w2, b2, compute_dtype=jnp.bfloat16,
                    resident_bytes_limit=0))
    assert out_stream.shape == (N, nout)
    assert jnp.allclose(out_stream, ref, atol=2e-2, rtol=2e-2)

    print("KERNEL_OK")
</pallas_src>

<mosaic_0001>
module attributes {stable_mosaic.version = 11 : i64} {
  func.func @kernel(%arg0: i32, %arg1: i32, %arg2: memref<128x128xf32, #tpu.memory_space<vmem>>, %arg3: memref<128x128xf32, #tpu.memory_space<vmem>>, %arg4: memref<128x128xf32, #tpu.memory_space<vmem>>, %arg5: memref<1x128xf32, #tpu.memory_space<vmem>>, %arg6: memref<128x128xf32, #tpu.memory_space<vmem>>, %arg7: memref<128x128xf32, #tpu.memory_space<vmem>>, %arg8: memref<128x128xf32, #tpu.memory_space<vmem>>) attributes {dimension_semantics = [#tpu.dimension_semantics<parallel>, #tpu.dimension_semantics<arbitrary>], iteration_bounds = array<i64: 1, 1>, scalar_prefetch = 0 : i64, scratch_operands = 1 : i64, tpu.core_type = #tpu.core_type<tc>, window_params = [{transform_indices = @transform_0, window_bounds = array<i64: 128, 128>}, {pipeline_mode = #tpu.pipeline_mode<synchronous>, transform_indices = @transform_1, window_bounds = array<i64: 128, 128>}, {pipeline_mode = #tpu.pipeline_mode<synchronous>, transform_indices = @transform_2, window_bounds = array<i64: 128, 128>}, {pipeline_mode = #tpu.pipeline_mode<synchronous>, transform_indices = @transform_3, window_bounds = array<i64: 1, 128>}, {pipeline_mode = #tpu.pipeline_mode<synchronous>, transform_indices = @transform_4, window_bounds = array<i64: 128, 128>}, {transform_indices = @transform_5, window_bounds = array<i64: 128, 128>}]} {
    %c0_i32 = arith.constant 0 : i32
    %0 = arith.cmpi eq, %arg1, %c0_i32 : i32
    %1 = arith.extui %0 : i1 to i32
    %c0_i32_0 = arith.constant 0 : i32
    %2 = arith.cmpi ne, %1, %c0_i32_0 : i32
    scf.if %2 {
      %cst_9 = arith.constant 0.000000e+00 : f32
      %15 = vector.broadcast %cst_9 : f32 to vector<128x128xf32>
      %c0_10 = arith.constant 0 : index
      %c0_11 = arith.constant 0 : index
      %16 = vector.load %arg8[%c0_10, %c0_11] : memref<128x128xf32, #tpu.memory_space<vmem>>, vector<128x128xf32>
      tpu.vector_store %arg8[%c0_10, %c0_11], %15 {strides = array<i32>} : memref<128x128xf32, #tpu.memory_space<vmem>>, vector<128x128xf32>,
    } else {
    }
    %c128_i32 = arith.constant 128 : i32
    %3 = arith.muli %arg1, %c128_i32 : i32
    %4 = tpu.assume_multiple %3, 128 : i32
    %5 = arith.index_cast %4 : i32 to index
    %c0 = arith.constant 0 : index
    %6 = vector.load %arg3[%5, %c0] : memref<128x128xf32, #tpu.memory_space<vmem>>, vector<128x128xf32>
    %c0_1 = arith.constant 0 : index
    %c0_2 = arith.constant 0 : index
    %7 = vector.load %arg8[%c0_1, %c0_2] : memref<128x128xf32, #tpu.memory_space<vmem>>, vector<128x128xf32>
    %c0_3 = arith.constant 0 : index
    %c0_4 = arith.constant 0 : index
    %8 = vector.load %arg2[%c0_3, %c0_4] : memref<128x128xf32, #tpu.memory_space<vmem>>, vector<128x128xf32>
    %cst = arith.constant dense<0.000000e+00> : vector<128x128xf32>
    %9 = tpu.matmul %8, %6, %cst {dimension_numbers = #tpu.dot_dimension_numbers<[1], [0], [0], [1], [0, 0, 1, 1], [], []>} : vector<128x128xf32>, vector<128x128xf32>, vector<128x128xf32> -> vector<128x128xf32>
    %10 = arith.addf %7, %9 : vector<128x128xf32>
    %c0_5 = arith.constant 0 : index
    %c0_6 = arith.constant 0 : index
    %11 = vector.load %arg8[%c0_5, %c0_6] : memref<128x128xf32, #tpu.memory_space<vmem>>, vector<128x128xf32>
    tpu.vector_store %arg8[%c0_5, %c0_6], %10 {strides = array<i32>} : memref<128x128xf32, #tpu.memory_space<vmem>>, vector<128x128xf32>,
    %c0_i32_7 = arith.constant 0 : i32
    %12 = arith.cmpi eq, %arg1, %c0_i32_7 : i32
    %13 = arith.extui %12 : i1 to i32
    %c0_i32_8 = arith.constant 0 : i32
    %14 = arith.cmpi ne, %13, %c0_i32_8 : i32
    scf.if %14 {
      %c0_9 = arith.constant 0 : index
      %c0_10 = arith.constant 0 : index
      %15 = vector.load %arg8[%c0_9, %c0_10] : memref<128x128xf32, #tpu.memory_space<vmem>>, vector<128x128xf32>
      %c0_11 = arith.constant 0 : index
      %c0_12 = arith.constant 0 : index
      %16 = vector.load %arg4[%c0_11, %c0_12] : memref<128x128xf32, #tpu.memory_space<vmem>>, vector<128x128xf32>
      %cst_13 = arith.constant dense<0.000000e+00> : vector<128x128xf32>
      %17 = tpu.matmul %15, %16, %cst_13 {dimension_numbers = #tpu.dot_dimension_numbers<[1], [0], [0], [1], [0, 0, 1, 1], [], []>} : vector<128x128xf32>, vector<128x128xf32>, vector<128x128xf32> -> vector<128x128xf32>
      %c0_14 = arith.constant 0 : index
      %c0_15 = arith.constant 0 : index
      %18 = vector.load %arg5[%c0_14, %c0_15] : memref<1x128xf32, #tpu.memory_space<vmem>>, vector<1x128xf32>
      %19 = vector.broadcast %18 : vector<1x128xf32> to vector<128x128xf32>
      %20 = arith.addf %17, %19 : vector<128x128xf32>
      %cst_16 = arith.constant 0.000000e+00 : f32
      %21 = vector.broadcast %cst_16 : f32 to vector<128x128xf32>
      %22 = arith.maximumf %20, %21 : vector<128x128xf32>
      %c0_17 = arith.constant 0 : index
      %c0_18 = arith.constant 0 : index
      %23 = vector.load %arg6[%c0_17, %c0_18] : memref<128x128xf32, #tpu.memory_space<vmem>>, vector<128x128xf32>
      %cst_19 = arith.constant dense<0.000000e+00> : vector<128x128xf32>
      %24 = tpu.matmul %22, %23, %cst_19 {dimension_numbers = #tpu.dot_dimension_numbers<[1], [0], [0], [1], [0, 0, 1, 1], [], []>} : vector<128x128xf32>, vector<128x128xf32>, vector<128x128xf32> -> vector<128x128xf32>
      %c0_20 = arith.constant 0 : index
      %c0_21 = arith.constant 0 : index
      %25 = vector.load %arg7[%c0_20, %c0_21] : memref<128x128xf32, #tpu.memory_space<vmem>>, vector<128x128xf32>
      tpu.vector_store %arg7[%c0_20, %c0_21], %24 {strides = array<i32>} : memref<128x128xf32, #tpu.memory_space<vmem>>, vector<128x128xf32>,
    } else {
    }
    return
  }
  func.func @transform_0(%arg0: i32, %arg1: i32) -> (i32, i32) {
    %c0_i32 = arith.constant 0 : i32
    return %arg0, %arg1 : i32, i32
  }
  func.func @transform_1(%arg0: i32, %arg1: i32) -> (i32, i32) {
    %c0_i32 = arith.constant 0 : i32
    %c0_i32_0 = arith.constant 0 : i32
    %c0_i32_1 = arith.constant 0 : i32
    return %c0_i32, %c0_i32_0 : i32, i32
  }
  func.func @transform_2(%arg0: i32, %arg1: i32) -> (i32, i32) {
    %c0_i32 = arith.constant 0 : i32
    %c0_i32_0 = arith.constant 0 : i32
    %c0_i32_1 = arith.constant 0 : i32
    return %c0_i32, %c0_i32_0 : i32, i32
  }
  func.func @transform_3(%arg0: i32, %arg1: i32) -> (i32, i32) {
    %c0_i32 = arith.constant 0 : i32
    %c0_i32_0 = arith.constant 0 : i32
    %c0_i32_1 = arith.constant 0 : i32
    return %c0_i32, %c0_i32_0 : i32, i32
  }
  func.func @transform_4(%arg0: i32, %arg1: i32) -> (i32, i32) {
    %c0_i32 = arith.constant 0 : i32
    %c0_i32_0 = arith.constant 0 : i32
    %c0_i32_1 = arith.constant 0 : i32
    return %c0_i32, %c0_i32_0 : i32, i32
  }
  func.func @transform_5(%arg0: i32, %arg1: i32) -> (i32, i32) {
    %c0_i32 = arith.constant 0 : i32
    %c0_i32_0 = arith.constant 0 : i32
    return %arg0, %c0_i32 : i32, i32
  }
}

</mosaic_0001>

<bundles_post_ra>
// kernel: tpu_custom_call.1
= control target key start
LH: loop header
LB: loop body
LE: loop exit
PB: predicated region body
PF: predicated region fallthrough
CT: control target
= control target key end

     0   :  { %10 = vsyncpa [#allocation4], 0  ;;  %s1204_s0 = inlined_call_operand.hbm [shape: f32[128,128], index: 0, kind: input, shape index: {}]   ;;  %s1205_s1 = inlined_call_operand.hbm [shape: f32[128,128], index: 1, kind: input, shape index: {}]   ;;  %s1206_s2 = inlined_call_operand.hbm [shape: f32[128,128], index: 2, kind: input, shape index: {}]   ;;  %s1207_s3 = inlined_call_operand.vmem [shape: f32[1,128], index: 3, kind: input, shape index: {}]   ;;  %s1208_s4 = inlined_call_operand.hbm [shape: f32[128,128], index: 4, kind: input, shape index: {}]   ;;  %s1209_s5 = inlined_call_operand.hbm [shape: f32[128,128], index: 5, kind: output, shape index: {}]  }
   0x1   :  { %11 = vsyncpa [#allocation7], 0 }
   0x2   :  { %12 = vsyncpa [#allocation10], 0 }
   0x3   :  { %13 = vsyncpa [#allocation5], 0  ;;  %s1134_s18 = smov [#allocation6]   ;;  %s1135_s20 = smov [#allocation3]  }
   0x4   :  { %s31_s19 = sshll.u32 %s1134_s18, 4  ;;  %s19_s21 = sshll.u32 %s1135_s20, 4  ;;  %s32_s19 = int_to_ptr.vmem [resolvable:$true] %s31_s19  ;;  %s20_s21 = int_to_ptr.vmem [resolvable:$true] %s19_s21 }
   0x5   :  { %s1034_s22 = scalar_lea.vmem %s32_s19, 2048  ;;  %p1039_p1 = scmp.lt.s32.totalorder %s32_s19, %s32_s19 }
   0x6   :  { %p1035_p0 = scmp.ne.s32.totalorder %s32_s19, %s1034_s22  ;;  %p1040_p2 = scmp.lt.s32.totalorder %s1034_s22, %s1034_s22 }
   0x8   :  { %p1041_p3 = por %p1040_p2, %p1039_p1 }
   0xa   :  { %p1042_p4 = pnand %p1041_p3, %p1035_p0 }
   0xc   :  { %1045 = shalt.err (!%p1042_p4)
}
   0xd   :  { %s1136_s23 = smov 128   ;;  %s1137_s24 = smov 8  }
   0xe   :  { %37 = dma.hbm_to_vmem [thread:$0]  %s1205_s1, 2048, %s32_s19, [#allocation7], %s1136_s23, %s1136_s23, %s1137_s24  }
   0xf   :  { %s1054_s27 = scalar_lea.vmem %s20_s21, 2048  ;;  %p1059_p6 = scmp.lt.s32.totalorder %s20_s21, %s20_s21 }
  0x10   :  { %p1055_p5 = scmp.ne.s32.totalorder %s20_s21, %s1054_s27  ;;  %p1060_p7 = scmp.lt.s32.totalorder %s1054_s27, %s1054_s27 }
  0x12   :  { %p1061_p8 = por %p1060_p7, %p1059_p6 }
  0x14   :  { %p1062_p9 = pnand %p1061_p8, %p1055_p5 }
  0x16   :  { %1065 = shalt.err (!%p1062_p9)
}
  0x17   :  { %25 = dma.hbm_to_vmem [thread:$0]  %s1204_s0, 2048, %s20_s21, [#allocation4], %s1136_s23, %s1136_s23, %s1137_s24  }
  0x18   :  { %s1138_s30 = smov [#allocation8]   ;;  %s1139_s7 = smov [#allocation9]  }
  0x19   :  { %s43_s6 = sshll.u32 %s1138_s30, 4  ;;  %s57_s8 = sshll.u32 %s1139_s7, 4  ;;  %s44_s6 = int_to_ptr.vmem [resolvable:$true] %s43_s6  ;;  %s58_s8 = int_to_ptr.vmem [resolvable:$true] %s57_s8 }
  0x1a   :  { %s1074_s1 = scalar_lea.vmem %s44_s6, 2048  ;;  %p1079_p11 = scmp.lt.s32.totalorder %s44_s6, %s44_s6 }
  0x1b   :  { %p1075_p10 = scmp.ne.s32.totalorder %s44_s6, %s1074_s1  ;;  %p1080_p12 = scmp.lt.s32.totalorder %s1074_s1, %s1074_s1 }
  0x1d   :  { %p1081_p13 = por %p1080_p12, %p1079_p11 }
  0x1f   :  { %p1082_p0 = pnand %p1081_p13, %p1075_p10 }
  0x21   :  { %1085 = shalt.err (!%p1082_p0)
}
  0x22   :  { %49 = dma.hbm_to_vmem [thread:$0]  %s1206_s2, 2048, %s44_s6, [#allocation7], %s1136_s23, %s1136_s23, %s1137_s24  }
  0x23   :  { %s1094_s0 = scalar_lea.vmem %s58_s8, 2048  ;;  %p1099_p2 = scmp.lt.s32.totalorder %s58_s8, %s58_s8 }
  0x24   :  { %p1095_p1 = scmp.ne.s32.totalorder %s58_s8, %s1094_s0  ;;  %p1100_p3 = scmp.lt.s32.totalorder %s1094_s0, %s1094_s0 }
  0x26   :  { %p1101_p4 = por %p1100_p3, %p1099_p2 }
  0x28   :  { %p1102_p5 = pnand %p1101_p4, %p1095_p1 }
  0x2a   :  { %1105 = shalt.err (!%p1102_p5)
}
  0x2b   :  { %63 = dma.hbm_to_vmem [thread:$0]  %s1208_s4, 2048, %s58_s8, [#allocation10], %s1136_s23, %s1136_s23, %s1137_s24  }
  0x2c   :  { %1126 = dma.done.wait [#allocation4], 2048  }
  0x2d   :  { %1127 = vsyncadd [#allocation4], 4294965248 }
  0x2e   :  { %1128 = dma.done.wait [#allocation7], 4096  }
  0x2f   :  { %1129 = vsyncadd [#allocation7], 4294963200 }
  0x30   :  { %1130 = dma.done.wait [#allocation10], 2048  }
  0x31   :  { %1131 = vsyncadd [#allocation10], 4294965248  ;;  %v113_v0 = vld [vmem:[#allocation6 + $0x78] sm:$0xff]  ;;  %v112_v1 = vld [vmem:[#allocation6 + $0x70] sm:$0xff] }
  0x32   :  { %819 = vmatprep.subr.mxu0 %v113_v0  ;;  %v111_v2 = vld [vmem:[#allocation6 + $0x68] sm:$0xff]  ;;  %v110_v3 = vld [vmem:[#allocation6 + $0x60] sm:$0xff]  ;;  %v109_v5 = vld [vmem:[#allocation6 + $0x58] sm:$0xff] }
  0x33   :  { %820 = vmatpush3.msra.mxu0 %v113_v0  ;;  %v130_v4 = vld [vmem:[#allocation3] sm:$0xff]  ;;  %v108_v6 = vld [vmem:[#allocation6 + $0x50] sm:$0xff]  ;;  %v107_v7 = vld [vmem:[#allocation6 + $0x48] sm:$0xff] }
  0x34   :  { %821 = vmatprep.subr.mxu0 %v112_v1  ;;  %851 = vmatprep.mubr.f32.mxu0 %v130_v4  ;;  %v357_v8 = vld [vmem:[#allocation8 + $0x78] sm:$0xff]  ;;  %v356_v9 = vld [vmem:[#allocation8 + $0x70] sm:$0xff]  ;;  %v106_v10 = vld [vmem:[#allocation6 + $0x40] sm:$0xff] }
  0x35   :  { %822 = vmatpush3.msra.mxu0 %v112_v1  ;;  %875 = vmatprep.subr.mxu1 %v357_v8  ;;  %v355_v11 = vld [vmem:[#allocation8 + $0x68] sm:$0xff]  ;;  %v105_v12 = vld [vmem:[#allocation6 + $0x38] sm:$0xff]  ;;  %v354_v13 = vld [vmem:[#allocation8 + $0x60] sm:$0xff] }
  0x36   :  { %823 = vmatprep.subr.mxu0 %v111_v2  ;;  %876 = vmatpush3.msra.mxu1 %v357_v8  ;;  %v104_v14 = vld [vmem:[#allocation6 + $0x30] sm:$0xff]  ;;  %v353_v15 = vld [vmem:[#allocation8 + $0x58] sm:$0xff]  ;;  %v103_v16 = vld [vmem:[#allocation6 + $0x28] sm:$0xff] }
  0x37   :  { %824 = vmatpush3.msra.mxu0 %v111_v2  ;;  %877 = vmatprep.subr.mxu1 %v356_v9  ;;  %v352_v17 = vld [vmem:[#allocation8 + $0x50] sm:$0xff]  ;;  %v102_v18 = vld [vmem:[#allocation6 + $0x20] sm:$0xff]  ;;  %v351_v19 = vld [vmem:[#allocation8 + $0x48] sm:$0xff] }
  0x38   :  { %825 = vmatprep.subr.mxu0 %v110_v3  ;;  %878 = vmatpush3.msra.mxu1 %v356_v9  ;;  %v101_v20 = vld [vmem:[#allocation6 + $0x18] sm:$0xff]  ;;  %v350_v21 = vld [vmem:[#allocation8 + $0x40] sm:$0xff]  ;;  %v100_v22 = vld [vmem:[#allocation6 + $0x10] sm:$0xff] }
  0x39   :  { %826 = vmatpush3.msra.mxu0 %v110_v3  ;;  %879 = vmatprep.subr.mxu1 %v355_v11  ;;  %v349_v23 = vld [vmem:[#allocation8 + $0x38] sm:$0xff]  ;;  %v99_v24 = vld [vmem:[#allocation6 + $0x8] sm:$0xff]  ;;  %v348_v25 = vld [vmem:[#allocation8 + $0x30] sm:$0xff] }
  0x3a   :  { %827 = vmatprep.subr.mxu0 %v109_v5  ;;  %880 = vmatpush3.msra.mxu1 %v355_v11  ;;  %v98_v26 = vld [vmem:[#allocation6] sm:$0xff]  ;;  %v347_v27 = vld [vmem:[#allocation8 + $0x28] sm:$0xff]  ;;  %v132_v30 = vld [vmem:[#allocation3 + $0x10] sm:$0xff] }
  0x3b   :  { %828 = vmatpush3.msra.mxu0 %v109_v5  ;;  %881 = vmatprep.subr.mxu1 %v354_v13  ;;  %v131_v28 = vld [vmem:[#allocation3 + $0x8] sm:$0xff]  ;;  %v346_v29 = vld [vmem:[#allocation8 + $0x20] sm:$0xff]  ;;  %v345_v31 = vld [vmem:[#allocation8 + $0x18] sm:$0xff] }
  0x3c   :  { %829 = vmatprep.subr.mxu0 %v108_v6  ;;  %882 = vmatpush3.msra.mxu1 %v354_v13  ;;  %v133_v32 = vld [vmem:[#allocation3 + $0x18] sm:$0xff]  ;;  %v344_v33 = vld [vmem:[#allocation8 + $0x10] sm:$0xff]  ;;  %v134_v34 = vld [vmem:[#allocation3 + $0x20] sm:$0xff] }
  0x3d   :  { %830 = vmatpush3.msra.mxu0 %v108_v6  ;;  %883 = vmatprep.subr.mxu1 %v353_v15  ;;  %v135_v35 = vld [vmem:[#allocation3 + $0x28] sm:$0xff]  ;;  %v136_v36 = vld [vmem:[#allocation3 + $0x30] sm:$0xff]  ;;  %v137_v37 = vld [vmem:[#allocation3 + $0x38] sm:$0xff] }
  0x3e   :  { %831 = vmatprep.subr.mxu0 %v107_v7  ;;  %884 = vmatpush3.msra.mxu1 %v353_v15  ;;  %v138_v38 = vld [vmem:[#allocation3 + $0x40] sm:$0xff]  ;;  %v139_v39 = vld [vmem:[#allocation3 + $0x48] sm:$0xff]  ;;  %v140_v40 = vld [vmem:[#allocation3 + $0x50] sm:$0xff] }
  0x3f   :  { %832 = vmatpush3.msra.mxu0 %v107_v7  ;;  %885 = vmatprep.subr.mxu1 %v352_v17  ;;  %v141_v41 = vld [vmem:[#allocation3 + $0x58] sm:$0xff]  ;;  %v142_v42 = vld [vmem:[#allocation3 + $0x60] sm:$0xff]  ;;  %v143_v43 = vld [vmem:[#allocation3 + $0x68] sm:$0xff] }
  0x40   :  { %833 = vmatprep.subr.mxu0 %v106_v10  ;;  %886 = vmatpush3.msra.mxu1 %v352_v17  ;;  %v144_v44 = vld [vmem:[#allocation3 + $0x70] sm:$0xff]  ;;  %v145_v45 = vld [vmem:[#allocation3 + $0x78] sm:$0xff]  ;;  %v343_v46 = vld [vmem:[#allocation8 + $0x8] sm:$0xff] }
  0x41   :  { %834 = vmatpush3.msra.mxu0 %v106_v10  ;;  %887 = vmatprep.subr.mxu1 %v351_v19  ;;  %v342_v47 = vld [vmem:[#allocation8] sm:$0xff]  ;;  %v541_v48 = vld [vmem:[#allocation9 + $0x78] sm:$0xff]  ;;  %v540_v49 = vld [vmem:[#allocation9 + $0x70] sm:$0xff] }
  0x42   :  { %835 = vmatprep.subr.mxu0 %v105_v12  ;;  %888 = vmatpush3.msra.mxu1 %v351_v19  ;;  %v539_v50 = vld [vmem:[#allocation9 + $0x68] sm:$0xff]  ;;  %v538_v51 = vld [vmem:[#allocation9 + $0x60] sm:$0xff]  ;;  %v537_v52 = vld [vmem:[#allocation9 + $0x58] sm:$0xff] }
  0x43   :  { %836 = vmatpush3.msra.mxu0 %v105_v12  ;;  %889 = vmatprep.subr.mxu1 %v350_v21  ;;  %v536_v53 = vld [vmem:[#allocation9 + $0x50] sm:$0xff]  ;;  %v535_v54 = vld [vmem:[#allocation9 + $0x48] sm:$0xff]  ;;  %v534_v55 = vld [vmem:[#allocation9 + $0x40] sm:$0xff] }
  0x44   :  { %837 = vmatprep.subr.mxu0 %v104_v14  ;;  %890 = vmatpush3.msra.mxu1 %v350_v21  ;;  %v533_v56 = vld [vmem:[#allocation9 + $0x38] sm:$0xff]  ;;  %v532_v57 = vld [vmem:[#allocation9 + $0x30] sm:$0xff]  ;;  %v531_v58 = vld [vmem:[#allocation9 + $0x28] sm:$0xff] }
  0x45   :  { %838 = vmatpush3.msra.mxu0 %v104_v14  ;;  %891 = vmatprep.subr.mxu1 %v349_v23  ;;  %v530_v59 = vld [vmem:[#allocation9 + $0x20] sm:$0xff]  ;;  %v529_v12 = vld [vmem:[#allocation9 + $0x18] sm:$0xff]  ;;  %v528_v13 = vld [vmem:[#allocation9 + $0x10] sm:$0xff] }
  0x46   :  { %839 = vmatprep.subr.mxu0 %v103_v16  ;;  %892 = vmatpush3.msra.mxu1 %v349_v23  ;;  %v527_v14 = vld [vmem:[#allocation9 + $0x8] sm:$0xff]  ;;  %v526_v15 = vld [vmem:[#allocation9] sm:$0xff] }
  0x47   :  { %840 = vmatpush3.msra.mxu0 %v103_v16  ;;  %893 = vmatprep.subr.mxu1 %v348_v25  ;;  %v722_v16 = vld [vmem:[%s1207_s3] ss:$0 sm:$0xff]  ;;  %s1140_s3 = smov [#allocation11]  }
  0x48   :  { %841 = vmatprep.subr.mxu0 %v102_v18  ;;  %894 = vmatpush3.msra.mxu1 %v348_v25  ;;  %s708_s13 = sshll.u32 %s1140_s3, 4  ;;  %s709_s13 = int_to_ptr.vmem [resolvable:$true] %s708_s13 }
  0x49   :  { %842 = vmatpush3.msra.mxu0 %v102_v18  ;;  %895 = vmatprep.subr.mxu1 %v347_v27  ;;  %s1106_s14 = scalar_lea.vmem %s709_s13, 2048  ;;  %p1111_p7 = scmp.lt.s32.totalorder %s709_s13, %s709_s13 }
  0x4a   :  { %843 = vmatprep.subr.mxu0 %v101_v20  ;;  %896 = vmatpush3.msra.mxu1 %v347_v27  ;;  %p1107_p6 = scmp.ne.s32.totalorder %s709_s13, %s1106_s14  ;;  %p1112_p8 = scmp.lt.s32.totalorder %s1106_s14, %s1106_s14 }
  0x4b   :  { %844 = vmatpush3.msra.mxu0 %v101_v20  ;;  %897 = vmatprep.subr.mxu1 %v346_v29 }
  0x4c   :  { %845 = vmatprep.subr.mxu0 %v100_v22  ;;  %898 = vmatpush3.msra.mxu1 %v346_v29  ;;  %p1113_p9 = por %p1112_p8, %p1111_p7 }
  0x4d   :  { %846 = vmatpush3.msra.mxu0 %v100_v22  ;;  %899 = vmatprep.subr.mxu1 %v345_v31 }
  0x4e   :  { %847 = vmatprep.subr.mxu0 %v99_v24  ;;  %900 = vmatpush3.msra.mxu1 %v345_v31  ;;  %p1114_p10 = pnand %p1113_p9, %p1107_p6 }
  0x4f   :  { %848 = vmatpush3.msra.mxu0 %v99_v24  ;;  %901 = vmatprep.subr.mxu1 %v344_v33 }
  0x50   :  { %849 = vmatprep.subr.mxu0 %v98_v26  ;;  %902 = vmatpush3.msra.mxu1 %v344_v33 }
  0x51   :  { %850 = vmatpush3.msra.mxu0 %v98_v26  ;;  %903 = vmatprep.subr.mxu1 %v343_v46 }
  0x52   :  { %852 = vmatmul.mubr.f32.vlgmr.msra.gmra.mxu0 %v131_v28  ;;  %904 = vmatpush3.msra.mxu1 %v343_v46 }
  0x53   :  { %854 = vmatprep.mubr.f32.mxu0 %v132_v30  ;;  %905 = vmatprep.subr.mxu1 %v342_v47 }
  0x54   :  { %906 = vmatpush3.msra.mxu1 %v342_v47  ;;  %931 = vmatprep.subr.mxu0 %v541_v48 }
  0x55   :  { %987 = vmatprep.subr.mxu1 %v541_v48  ;;  %932 = vmatpush3.msra.mxu0 %v541_v48 }
  0x56   :  { %855 = vmatmul.mubr.f32.gmra.mxu0 %v133_v32  ;;  %933 = vmatprep.subr.mxu0 %v540_v49 }
  0x57   :  { %857 = vmatprep.mubr.f32.mxu0 %v134_v34  ;;  %934 = vmatpush3.msra.mxu0 %v540_v49 }
  0x58   :  { %935 = vmatprep.subr.mxu0 %v539_v50 }
  0x59   :  { %936 = vmatpush3.msra.mxu0 %v539_v50 }
  0x5a   :  { %858 = vmatmul.mubr.f32.gmra.mxu0 %v135_v35  ;;  %937 = vmatprep.subr.mxu0 %v538_v51 }
  0x5b   :  { %860 = vmatprep.mubr.f32.mxu0 %v136_v36  ;;  %938 = vmatpush3.msra.mxu0 %v538_v51 }
  0x5c   :  { %939 = vmatprep.subr.mxu0 %v537_v52 }
  0x5d   :  { %940 = vmatpush3.msra.mxu0 %v537_v52 }
  0x5e   :  { %861 = vmatmul.mubr.f32.gmra.mxu0 %v137_v37  ;;  %941 = vmatprep.subr.mxu0 %v536_v53 }
  0x5f   :  { %863 = vmatprep.mubr.f32.mxu0 %v138_v38  ;;  %942 = vmatpush3.msra.mxu0 %v536_v53 }
  0x60   :  { %943 = vmatprep.subr.mxu0 %v535_v54 }
  0x61   :  { %944 = vmatpush3.msra.mxu0 %v535_v54 }
  0x62   :  { %864 = vmatmul.mubr.f32.gmra.mxu0 %v139_v39  ;;  %945 = vmatprep.subr.mxu0 %v534_v55 }
  0x63   :  { %866 = vmatprep.mubr.f32.mxu0 %v140_v40  ;;  %946 = vmatpush3.msra.mxu0 %v534_v55 }
  0x64   :  { %947 = vmatprep.subr.mxu0 %v533_v56 }
  0x65   :  { %948 = vmatpush3.msra.mxu0 %v533_v56 }
  0x66   :  { %867 = vmatmul.mubr.f32.gmra.mxu0 %v141_v41  ;;  %949 = vmatprep.subr.mxu0 %v532_v57 }
  0x67   :  { %869 = vmatprep.mubr.f32.mxu0 %v142_v42  ;;  %950 = vmatpush3.msra.mxu0 %v532_v57 }
  0x68   :  { %951 = vmatprep.subr.mxu0 %v531_v58 }
  0x69   :  { %952 = vmatpush3.msra.mxu0 %v531_v58 }
  0x6a   :  { %870 = vmatmul.mubr.f32.gmra.mxu0 %v143_v43  ;;  %953 = vmatprep.subr.mxu0 %v530_v59 }
  0x6b   :  { %872 = vmatprep.mubr.f32.mxu0 %v144_v44  ;;  %954 = vmatpush3.msra.mxu0 %v530_v59 }
  0x6c   :  { %955 = vmatprep.subr.mxu0 %v529_v12 }
  0x6d   :  { %956 = vmatpush3.msra.mxu0 %v529_v12 }
  0x6e   :  { %873 = vmatmul.mubr.f32.gmra.mxu0 %v145_v45  ;;  %957 = vmatprep.subr.mxu0 %v528_v13 }
  0x6f   :  { %958 = vmatpush3.msra.mxu0 %v528_v13 }
  0x70   :  { %959 = vmatprep.subr.mxu0 %v527_v14 }
  0x71   :  { %960 = vmatpush3.msra.mxu0 %v527_v14 }
  0x72   :  { %961 = vmatprep.subr.mxu0 %v526_v15 }
  0x73   :  { %962 = vmatpush3.msra.mxu0 %v526_v15 }
 0x112   :  { %v853_v60 = vpop.f32.mrf.mxu0 }
 0x114   :  { %v212_v61 = vpop.f32.mrf.mxu0 }
 0x115   :  { %907 = vmatprep.mubr.f32.mxu1 %v212_v61 }
 0x116   :  { %v856_v62 = vpop.f32.mrf.mxu0  ;;  %908 = vmatmul.mubr.f32.vlgmr.msra.gmra.mxu1 %v853_v60 }
 0x117   :  { %1003 = vmatpush3.msra.mxu1 %v541_v48 }
 0x118   :  { %v222_v63 = vpop.f32.mrf.mxu0  ;;  %988 = vmatprep.subr.mxu1 %v540_v49 }
 0x119   :  { %910 = vmatprep.mubr.f32.mxu1 %v222_v63  ;;  %1004 = vmatpush3.msra.mxu1 %v540_v49 }
 0x11a   :  { %v859_v0 = vpop.f32.mrf.mxu0  ;;  %911 = vmatmul.mubr.f32.gmra.mxu1 %v856_v62  ;;  %989 = vmatprep.subr.mxu1 %v539_v50 }
 0x11b   :  { %1005 = vmatpush3.msra.mxu1 %v539_v50 }
 0x11c   :  { %v232_v1 = vpop.f32.mrf.mxu0  ;;  %990 = vmatprep.subr.mxu1 %v538_v51 }
 0x11d   :  { %913 = vmatprep.mubr.f32.mxu1 %v232_v1  ;;  %1006 = vmatpush3.msra.mxu1 %v538_v51 }
 0x11e   :  { %v862_v2 = vpop.f32.mrf.mxu0  ;;  %914 = vmatmul.mubr.f32.gmra.mxu1 %v859_v0  ;;  %991 = vmatprep.subr.mxu1 %v537_v52 }
 0x11f   :  { %1007 = vmatpush3.msra.mxu1 %v537_v52 }
 0x120   :  { %v242_v3 = vpop.f32.mrf.mxu0  ;;  %992 = vmatprep.subr.mxu1 %v536_v53 }
 0x121   :  { %916 = vmatprep.mubr.f32.mxu1 %v242_v3  ;;  %1008 = vmatpush3.msra.mxu1 %v536_v53 }
 0x122   :  { %v865_v4 = vpop.f32.mrf.mxu0  ;;  %917 = vmatmul.mubr.f32.gmra.mxu1 %v862_v2  ;;  %993 = vmatprep.subr.mxu1 %v535_v54 }
 0x123   :  { %1009 = vmatpush3.msra.mxu1 %v535_v54 }
 0x124   :  { %v252_v5 = vpop.f32.mrf.mxu0  ;;  %994 = vmatprep.subr.mxu1 %v534_v55 }
 0x125   :  { %919 = vmatprep.mubr.f32.mxu1 %v252_v5  ;;  %1010 = vmatpush3.msra.mxu1 %v534_v55 }
 0x126   :  { %v868_v6 = vpop.f32.mrf.mxu0  ;;  %920 = vmatmul.mubr.f32.gmra.mxu1 %v865_v4  ;;  %995 = vmatprep.subr.mxu1 %v533_v56 }
 0x127   :  { %1011 = vmatpush3.msra.mxu1 %v533_v56 }
 0x128   :  { %v262_v7 = vpop.f32.mrf.mxu0  ;;  %996 = vmatprep.subr.mxu1 %v532_v57 }
 0x129   :  { %922 = vmatprep.mubr.f32.mxu1 %v262_v7  ;;  %1012 = vmatpush3.msra.mxu1 %v532_v57 }
 0x12a   :  { %v871_v8 = vpop.f32.mrf.mxu0  ;;  %923 = vmatmul.mubr.f32.gmra.mxu1 %v868_v6  ;;  %997 = vmatprep.subr.mxu1 %v531_v58 }
 0x12b   :  { %1013 = vmatpush3.msra.mxu1 %v531_v58 }
 0x12c   :  { %v272_v9 = vpop.f32.mrf.mxu0  ;;  %998 = vmatprep.subr.mxu1 %v530_v59 }
 0x12d   :  { %925 = vmatprep.mubr.f32.mxu1 %v272_v9  ;;  %1014 = vmatpush3.msra.mxu1 %v530_v59 }
 0x12e   :  { %v874_v10 = vpop.f32.mrf.mxu0  ;;  %926 = vmatmul.mubr.f32.gmra.mxu1 %v871_v8  ;;  %999 = vmatprep.subr.mxu1 %v529_v12 }
 0x12f   :  { %1015 = vmatpush3.msra.mxu1 %v529_v12 }
 0x130   :  { %v282_v11 = vpop.f32.mrf.mxu0  ;;  %1000 = vmatprep.subr.mxu1 %v528_v13 }
 0x131   :  { %928 = vmatprep.mubr.f32.mxu1 %v282_v11  ;;  %1016 = vmatpush3.msra.mxu1 %v528_v13 }
 0x132   :  { %929 = vmatmul.mubr.f32.gmra.mxu1 %v874_v10  ;;  %1001 = vmatprep.subr.mxu1 %v527_v14 }
 0x133   :  { %1017 = vmatpush3.msra.mxu1 %v527_v14 }
 0x134   :  { %1002 = vmatprep.subr.mxu1 %v526_v15 }
 0x135   :  { %1018 = vmatpush3.msra.mxu1 %v526_v15 }
 0x1d6   :  { %v909_v17 = vpop.f32.mrf.mxu1 }
 0x1d7   :  { %v437_v18 = vadd.f32 %v909_v17, %v722_v16 }
 0x1d8   :  { %v431_v19 = vpop.f32.mrf.mxu1 }
 0x1d9   :  { %v432_v20 = vadd.f32 %v722_v16, %v431_v19  ;;  %v511_v23 = vmax.f32 %v437_v18, 0.0 }
 0x1da   :  { %v912_v21 = vpop.f32.mrf.mxu1 }
 0x1db   :  { %v510_v22 = vmax.f32 %v432_v20, 0.0  ;;  %v447_v24 = vadd.f32 %v912_v21, %v722_v16 }
 0x1dc   :  { %v441_v25 = vpop.f32.mrf.mxu1 }
 0x1dd   :  { %v442_v26 = vadd.f32 %v722_v16, %v441_v25  ;;  %963 = vmatprep.mubr.f32.mxu0 %v510_v22  ;;  %v513_v29 = vmax.f32 %v447_v24, 0.0 }
 0x1de   :  { %v915_v27 = vpop.f32.mrf.mxu1  ;;  %964 = vmatmul.mubr.f32.vlgmr.msra.gmra.mxu0 %v511_v23 }
 0x1df   :  { %v512_v28 = vmax.f32 %v442_v26, 0.0  ;;  %v457_v30 = vadd.f32 %v915_v27, %v722_v16 }
 0x1e0   :  { %v451_v31 = vpop.f32.mrf.mxu1 }
 0x1e1   :  { %v452_v32 = vadd.f32 %v722_v16, %v451_v31  ;;  %966 = vmatprep.mubr.f32.mxu0 %v512_v28  ;;  %v515_v35 = vmax.f32 %v457_v30, 0.0 }
 0x1e2   :  { %v918_v33 = vpop.f32.mrf.mxu1  ;;  %967 = vmatmul.mubr.f32.gmra.mxu0 %v513_v29 }
 0x1e3   :  { %v514_v34 = vmax.f32 %v452_v32, 0.0  ;;  %v467_v36 = vadd.f32 %v918_v33, %v722_v16 }
 0x1e4   :  { %v461_v37 = vpop.f32.mrf.mxu1 }
 0x1e5   :  { %v462_v38 = vadd.f32 %v722_v16, %v461_v37  ;;  %969 = vmatprep.mubr.f32.mxu0 %v514_v34  ;;  %v517_v41 = vmax.f32 %v467_v36, 0.0 }
 0x1e6   :  { %v921_v39 = vpop.f32.mrf.mxu1  ;;  %970 = vmatmul.mubr.f32.gmra.mxu0 %v515_v35 }
 0x1e7   :  { %v516_v40 = vmax.f32 %v462_v38, 0.0  ;;  %v477_v42 = vadd.f32 %v921_v39, %v722_v16 }
 0x1e8   :  { %v471_v43 = vpop.f32.mrf.mxu1 }
 0x1e9   :  { %v472_v44 = vadd.f32 %v722_v16, %v471_v43  ;;  %972 = vmatprep.mubr.f32.mxu0 %v516_v40  ;;  %v519_v47 = vmax.f32 %v477_v42, 0.0 }
 0x1ea   :  { %v924_v45 = vpop.f32.mrf.mxu1  ;;  %973 = vmatmul.mubr.f32.gmra.mxu0 %v517_v41 }
 0x1eb   :  { %v518_v46 = vmax.f32 %v472_v44, 0.0  ;;  %v487_v48 = vadd.f32 %v924_v45, %v722_v16 }
 0x1ec   :  { %v481_v49 = vpop.f32.mrf.mxu1 }
 0x1ed   :  { %v482_v50 = vadd.f32 %v722_v16, %v481_v49  ;;  %975 = vmatprep.mubr.f32.mxu1 %v518_v46  ;;  %v521_v53 = vmax.f32 %v487_v48, 0.0 }
 0x1ee   :  { %v927_v51 = vpop.f32.mrf.mxu1  ;;  %976 = vmatmul.mubr.f32.vlgmr.msra.gmra.mxu1 %v519_v47 }
 0x1ef   :  { %v520_v52 = vmax.f32 %v482_v50, 0.0  ;;  %v497_v54 = vadd.f32 %v927_v51, %v722_v16 }
 0x1f0   :  { %v491_v55 = vpop.f32.mrf.mxu1 }
 0x1f1   :  { %v492_v56 = vadd.f32 %v722_v16, %v491_v55  ;;  %978 = vmatprep.mubr.f32.mxu1 %v520_v52  ;;  %v523_v59 = vmax.f32 %v497_v54, 0.0 }
 0x1f2   :  { %v930_v57 = vpop.f32.mrf.mxu1  ;;  %979 = vmatmul.mubr.f32.gmra.mxu1 %v521_v53 }
 0x1f3   :  { %v522_v58 = vmax.f32 %v492_v56, 0.0  ;;  %v507_v60 = vadd.f32 %v930_v57, %v722_v16 }
 0x1f4   :  { %v501_v61 = vpop.f32.mrf.mxu1 }
 0x1f5   :  { %v502_v62 = vadd.f32 %v722_v16, %v501_v61  ;;  %981 = vmatprep.mubr.f32.mxu1 %v522_v58  ;;  %v525_v0 = vmax.f32 %v507_v60, 0.0 }
 0x1f6   :  { %982 = vmatmul.mubr.f32.gmra.mxu1 %v523_v59 }
 0x1f7   :  { %v524_v63 = vmax.f32 %v502_v62, 0.0 }
 0x1f9   :  { %984 = vmatprep.mubr.f32.mxu1 %v524_v63 }
 0x1fa   :  { %985 = vmatmul.mubr.f32.gmra.mxu1 %v525_v0 }
 0x29e   :  { %v965_v1 = vpop.f32.mrf.mxu0 }
 0x29f   :  { %688 = vst [vmem:[#allocation11 + $0x8] sm:$0xff] %v965_v1 }
 0x2a0   :  { %v608_v2 = vpop.f32.mrf.mxu0 }
 0x2a1   :  { %687 = vst [vmem:[#allocation11] sm:$0xff] %v608_v2 }
 0x2a2   :  { %v968_v3 = vpop.f32.mrf.mxu0 }
 0x2a3   :  { %690 = vst [vmem:[#allocation11 + $0x18] sm:$0xff] %v968_v3 }
 0x2a4   :  { %v618_v4 = vpop.f32.mrf.mxu0 }
 0x2a5   :  { %689 = vst [vmem:[#allocation11 + $0x10] sm:$0xff] %v618_v4 }
 0x2a6   :  { %v971_v5 = vpop.f32.mrf.mxu0 }
 0x2a7   :  { %692 = vst [vmem:[#allocation11 + $0x28] sm:$0xff] %v971_v5 }
 0x2a8   :  { %v628_v6 = vpop.f32.mrf.mxu0 }
 0x2a9   :  { %691 = vst [vmem:[#allocation11 + $0x20] sm:$0xff] %v628_v6 }
 0x2aa   :  { %v974_v7 = vpop.f32.mrf.mxu0 }
 0x2ab   :  { %694 = vst [vmem:[#allocation11 + $0x38] sm:$0xff] %v974_v7 }
 0x2ac   :  { %v638_v8 = vpop.f32.mrf.mxu0 }
 0x2ad   :  { %693 = vst [vmem:[#allocation11 + $0x30] sm:$0xff] %v638_v8 }
 0x2ae   :  { %v977_v9 = vpop.f32.mrf.mxu1 }
 0x2af   :  { %696 = vst [vmem:[#allocation11 + $0x48] sm:$0xff] %v977_v9 }
 0x2b0   :  { %v648_v10 = vpop.f32.mrf.mxu1 }
 0x2b1   :  { %695 = vst [vmem:[#allocation11 + $0x40] sm:$0xff] %v648_v10 }
 0x2b2   :  { %v980_v11 = vpop.f32.mrf.mxu1 }
 0x2b3   :  { %698 = vst [vmem:[#allocation11 + $0x58] sm:$0xff] %v980_v11 }
 0x2b4   :  { %v658_v12 = vpop.f32.mrf.mxu1 }
 0x2b5   :  { %697 = vst [vmem:[#allocation11 + $0x50] sm:$0xff] %v658_v12 }
 0x2b6   :  { %v983_v13 = vpop.f32.mrf.mxu1 }
 0x2b7   :  { %700 = vst [vmem:[#allocation11 + $0x68] sm:$0xff] %v983_v13 }
 0x2b8   :  { %v668_v14 = vpop.f32.mrf.mxu1 }
 0x2b9   :  { %699 = vst [vmem:[#allocation11 + $0x60] sm:$0xff] %v668_v14 }
 0x2ba   :  { %v986_v15 = vpop.f32.mrf.mxu1 }
 0x2bb   :  { %702 = vst [vmem:[#allocation11 + $0x78] sm:$0xff] %v986_v15 }
 0x2bc   :  { %v678_v16 = vpop.f32.mrf.mxu1 }
 0x2bd   :  { %701 = vst [vmem:[#allocation11 + $0x70] sm:$0xff] %v678_v16 }
 0x2be   :  { %1117 = shalt.err (!%p1114_p10)
}
 0x2bf   :  { %714 = dma.vmem_to_hbm [thread:$0]  %s709_s13, 2048, %s1209_s5, [#allocation5], %s1136_s23, %s1136_s23, %s1137_s24  }
 0x2c0   :  { %1132 = dma.done.wait [#allocation5], 2048  }
 0x2c1   :  { %1133 = vsyncadd [#allocation5], 4294965248 }
 0x2c2   :  { %718 = vsyncpa [#allocation4], 1 }
 0x2c3   :  { %719 = vsyncpa [#allocation7], 1 }
 0x2c4   :  { %720 = vsyncpa [#allocation10], 1 }
 0x2c5   :  { %721 = vsyncpa [#allocation5], 1 }

</bundles_post_ra>
